<compile_context>
chip_gen: v7x
topology: tpu7x:2x2x1
jax: 0.10.0
libtpu: 0.0.40
codegen_flags: <defaults>
</compile_context>

<pallas_src>
import jax
import jax.numpy as jnp
from jax.experimental import pallas as pl
from jax.experimental.pallas import tpu as pltpu

# ----- config (mirrors the fields of `Config` used by the PyTorch module) -----
B = 2            # batch
C = 4            # input channels
H = W = 16       # spatial
P = 4            # ViT patch size
H_PATCH = H // P
W_PATCH = W // P
N = H_PATCH * W_PATCH        # 16 patch tokens
D = 32                       # n_features (embed dim)
OUT = 384                    # fc output dim
NORM_EPS = 1e-12             # F.normalize default eps


def _full_spec(shape):
    nd = len(shape)
    return pl.BlockSpec(shape, lambda *_: (0,) * nd)


# --------------------------- fused Pallas kernel ------------------------------

def fused_vit_kernel(xp_ref, wp_ref, bp_ref, pos_ref, cls_ref, wfc_ref, bfc_ref,
                     o_ref, feat_ref):
    # xp:  (B*N, C*P*P)   wp: (C*P*P, D)   bp: (1, D)
    # pos: (1, N, D)      cls: (1, D)
    # wfc: (2*D, OUT)  == PyTorch fc.weight.T   bfc: (1, OUT)
    # feat_ref: VMEM scratch (B, 2*D)

    # ---- patch embed: one MXU dot; result stays in vregs/VMEM ----
    tok = jnp.dot(xp_ref[...], wp_ref[...], preferred_element_type=jnp.float32)
    tok = tok + bp_ref[...]                       # (1, D) broadcast
    tok = tok.reshape(B, N, D) + pos_ref[...]     # + positional embedding

    # ---- AdaptiveAvgMaxPool2d over the N spatial tokens ----
    avg = jnp.mean(tok, axis=1)                   # (B, D)  adaptive_avg_pool2d
    mx = jnp.max(tok, axis=1)                     # (B, D)  adaptive_max_pool2d
    pooled = 0.5 * (avg + mx)

    # ---- feat = cat([cls, pooled], dim=1), built in VMEM scratch ----
    feat_ref[:, :D] = jnp.broadcast_to(cls_ref[...], (B, D))
    feat_ref[:, D:] = pooled

    # ---- fc: single (B, 2D) @ (2D, OUT) MXU pass + bias ----
    y = jnp.dot(feat_ref[...], wfc_ref[...], preferred_element_type=jnp.float32)
    y = y + bfc_ref[...]

    # ---- F.normalize(p=2, dim=1): y / max(||y||, eps) via one rsqrt ----
    sumsq = jnp.sum(y * y, axis=1, keepdims=True)
    inv = jax.lax.rsqrt(jnp.maximum(sumsq, NORM_EPS * NORM_EPS))
    o_ref[...] = y * inv


# --------------------------- wrapper ------------------------------------------

def _patchify(x):
    # NCHW -> (B*N, C*P*P); cheap 8 KB XLA transpose (see TODO above).
    xb = x.reshape(B, C, H_PATCH, P, W_PATCH, P)
    return xb.transpose(0, 2, 4, 1, 3, 5).reshape(B * N, C * P * P)


_COST = pl.CostEstimate(
    flops=2 * (B * N) * (C * P * P) * D        # patch-embed matmul
          + 2 * B * (2 * D) * OUT              # fc matmul
          + 8 * B * N * D,                     # bias/pos/pool elementwise
    transcendentals=B,                          # one rsqrt per row
    bytes_accessed=4 * ((B * N) * (C * P * P) + (C * P * P) * D + D + N * D
                        + D + (2 * D) * OUT + OUT + B * OUT),
)


@jax.jit
def timm_vit_model_forward(x, params):
    xp = _patchify(x)
    return pl.pallas_call(
        fused_vit_kernel,
        out_shape=jax.ShapeDtypeStruct((B, OUT), jnp.float32),
        in_specs=[
            _full_spec((B * N, C * P * P)),   # xp
            _full_spec((C * P * P, D)),       # w_patch
            _full_spec((1, D)),               # b_patch
            _full_spec((1, N, D)),            # pos_embed
            _full_spec((1, D)),               # cls_token
            _full_spec((2 * D, OUT)),         # w_fc_t
            _full_spec((1, OUT)),             # b_fc
        ],
        out_specs=_full_spec((B, OUT)),
        scratch_shapes=[pltpu.VMEM((B, 2 * D), jnp.float32)],
        cost_estimate=_COST,
    )(xp, params["w_patch"], params["b_patch"], params["pos_embed"],
      params["cls_token"], params["w_fc_t"], params["b_fc"])


# --------------------------- pure-JAX reference --------------------------------

def reference_forward(x, params):
    xb = x.reshape(B, C, H_PATCH, P, W_PATCH, P)
    xb = xb.transpose(0, 2, 4, 1, 3, 5).reshape(B, N, C * P * P)
    tok = xb @ params["w_patch"] + params["b_patch"]
    tok = tok + params["pos_embed"]
    cls = jnp.broadcast_to(params["cls_token"], (B, D))
    pooled = 0.5 * (tok.mean(axis=1) + tok.max(axis=1))
    feat = jnp.concatenate([cls, pooled], axis=1)
    y = feat @ params["w_fc_t"] + params["b_fc"]
    nrm = jnp.sqrt(jnp.sum(y * y, axis=1, keepdims=True))
    return y / jnp.maximum(nrm, NORM_EPS)


# --------------------------- main -----------------------------------------------

if __name__ == "__main__":
    key = jax.random.PRNGKey(0)
    k_x, k_wp, k_cls, k_pos, k_fc = jax.random.split(key, 5)

    x = jax.random.normal(k_x, (B, C, H, W), dtype=jnp.float32)

    fan_in, fan_out = 2 * D, OUT
    xavier_std = (2.0 / (fan_in + fan_out)) ** 0.5  # nn.init.xavier_normal_
    params = {
        "w_patch": jax.random.normal(k_wp, (C * P * P, D), jnp.float32) * 0.02,
        "b_patch": jnp.zeros((1, D), jnp.float32),
        "cls_token": jax.random.normal(k_cls, (1, D), jnp.float32) * 0.02,
        "pos_embed": jax.random.normal(k_pos, (1, N, D), jnp.float32) * 0.02,
        "w_fc_t": jax.random.normal(k_fc, (2 * D, OUT), jnp.float32) * xavier_std,
        "b_fc": jnp.zeros((1, OUT), jnp.float32),   # nn.init.constant_(fc.bias, 0)
    }

    out = jax.block_until_ready(timm_vit_model_forward(x, params))
    ref = reference_forward(x, params)

    assert out.shape == (B, OUT), out.shape
    assert jnp.allclose(out, ref, rtol=1e-5, atol=1e-5), "mismatch vs reference"
    print("KERNEL_OK")
</pallas_src>

<mosaic_0001>
module attributes {stable_mosaic.version = 11 : i64} {
  func.func @fused_vit_kernel(%arg0: memref<32x64xf32, #tpu.memory_space<vmem>>, %arg1: memref<64x32xf32, #tpu.memory_space<vmem>>, %arg2: memref<1x32xf32, #tpu.memory_space<vmem>>, %arg3: memref<1x16x32xf32, #tpu.memory_space<vmem>>, %arg4: memref<1x32xf32, #tpu.memory_space<vmem>>, %arg5: memref<64x384xf32, #tpu.memory_space<vmem>>, %arg6: memref<1x384xf32, #tpu.memory_space<vmem>>, %arg7: memref<2x384xf32, #tpu.memory_space<vmem>>, %arg8: memref<2x64xf32, #tpu.memory_space<vmem>>) attributes {dimension_semantics = [], scalar_prefetch = 0 : i64, scratch_operands = 1 : i64, tpu.core_type = #tpu.core_type<tc>} {
    %c0 = arith.constant 0 : index
    %c0_0 = arith.constant 0 : index
    %0 = vector.load %arg0[%c0, %c0_0] : memref<32x64xf32, #tpu.memory_space<vmem>>, vector<32x64xf32>
    %c0_1 = arith.constant 0 : index
    %c0_2 = arith.constant 0 : index
    %1 = vector.load %arg1[%c0_1, %c0_2] : memref<64x32xf32, #tpu.memory_space<vmem>>, vector<64x32xf32>
    %cst = arith.constant dense<0.000000e+00> : vector<32x32xf32>
    %2 = tpu.matmul %0, %1, %cst {dimension_numbers = #tpu.dot_dimension_numbers<[1], [0], [0], [1], [0, 0, 1, 1], [], []>} : vector<32x64xf32>, vector<64x32xf32>, vector<32x32xf32> -> vector<32x32xf32>
    %c0_3 = arith.constant 0 : index
    %c0_4 = arith.constant 0 : index
    %3 = vector.load %arg2[%c0_3, %c0_4] : memref<1x32xf32, #tpu.memory_space<vmem>>, vector<1x32xf32>
    %4 = vector.broadcast %3 : vector<1x32xf32> to vector<32x32xf32>
    %5 = arith.addf %2, %4 : vector<32x32xf32>
    %6 = vector.shape_cast %5 : vector<32x32xf32> to vector<2x16x32xf32>
    %c0_5 = arith.constant 0 : index
    %c0_6 = arith.constant 0 : index
    %c0_7 = arith.constant 0 : index
    %7 = vector.load %arg3[%c0_5, %c0_6, %c0_7] : memref<1x16x32xf32, #tpu.memory_space<vmem>>, vector<1x16x32xf32>
    %8 = vector.broadcast %7 : vector<1x16x32xf32> to vector<2x16x32xf32>
    %9 = arith.addf %6, %8 : vector<2x16x32xf32>
    %cst_8 = arith.constant dense<0.000000e+00> : vector<2x32xf32>
    %10 = vector.multi_reduction <add>, %9, %cst_8 [1] : vector<2x16x32xf32> to vector<2x32xf32>
    %cst_9 = arith.constant 1.600000e+01 : f32
    %11 = vector.broadcast %cst_9 : f32 to vector<2x32xf32>
    %12 = arith.divf %10, %11 : vector<2x32xf32>
    %cst_10 = arith.constant dense<0xFF800000> : vector<2x32xf32>
    %13 = vector.multi_reduction <maximumf>, %9, %cst_10 [1] : vector<2x16x32xf32> to vector<2x32xf32>
    %14 = arith.addf %12, %13 : vector<2x32xf32>
    %cst_11 = arith.constant 5.000000e-01 : f32
    %15 = vector.broadcast %cst_11 : f32 to vector<2x32xf32>
    %16 = arith.mulf %15, %14 : vector<2x32xf32>
    %c0_12 = arith.constant 0 : index
    %c0_13 = arith.constant 0 : index
    %17 = vector.load %arg4[%c0_12, %c0_13] : memref<1x32xf32, #tpu.memory_space<vmem>>, vector<1x32xf32>
    %18 = vector.shape_cast %17 : vector<1x32xf32> to vector<1x32xf32>
    %19 = vector.broadcast %18 : vector<1x32xf32> to vector<2x32xf32>
    %c0_14 = arith.constant 0 : index
    %c0_15 = arith.constant 0 : index
    %20 = vector.load %arg8[%c0_14, %c0_15] : memref<2x64xf32, #tpu.memory_space<vmem>>, vector<2x32xf32>
    tpu.vector_store %arg8[%c0_14, %c0_15], %19 {strides = array<i32>} : memref<2x64xf32, #tpu.memory_space<vmem>>, vector<2x32xf32>,
    %c0_16 = arith.constant 0 : index
    %c32 = arith.constant 32 : index
    %21 = vector.load %arg8[%c0_16, %c32] : memref<2x64xf32, #tpu.memory_space<vmem>>, vector<2x32xf32>
    tpu.vector_store %arg8[%c0_16, %c32], %16 {strides = array<i32>} : memref<2x64xf32, #tpu.memory_space<vmem>>, vector<2x32xf32>,
    %c0_17 = arith.constant 0 : index
    %c0_18 = arith.constant 0 : index
    %22 = vector.load %arg8[%c0_17, %c0_18] : memref<2x64xf32, #tpu.memory_space<vmem>>, vector<2x64xf32>
    %c0_19 = arith.constant 0 : index
    %c0_20 = arith.constant 0 : index
    %23 = vector.load %arg5[%c0_19, %c0_20] : memref<64x384xf32, #tpu.memory_space<vmem>>, vector<64x384xf32>
    %cst_21 = arith.constant dense<0.000000e+00> : vector<2x384xf32>
    %24 = tpu.matmul %22, %23, %cst_21 {dimension_numbers = #tpu.dot_dimension_numbers<[1], [0], [0], [1], [0, 0, 1, 1], [], []>} : vector<2x64xf32>, vector<64x384xf32>, vector<2x384xf32> -> vector<2x384xf32>
    %c0_22 = arith.constant 0 : index
    %c0_23 = arith.constant 0 : index
    %25 = vector.load %arg6[%c0_22, %c0_23] : memref<1x384xf32, #tpu.memory_space<vmem>>, vector<1x384xf32>
    %26 = vector.broadcast %25 : vector<1x384xf32> to vector<2x384xf32>
    %27 = arith.addf %24, %26 : vector<2x384xf32>
    %28 = arith.mulf %27, %27 : vector<2x384xf32>
    %cst_24 = arith.constant dense<0.000000e+00> : vector<2xf32>
    %29 = vector.multi_reduction <add>, %28, %cst_24 [1] : vector<2x384xf32> to vector<2xf32>
    %30 = vector.shape_cast %29 : vector<2xf32> to vector<2x1xf32>
    %cst_25 = arith.constant 1.000000e-24 : f32
    %31 = vector.broadcast %cst_25 : f32 to vector<2x1xf32>
    %32 = arith.maximumf %30, %31 : vector<2x1xf32>
    %33 = math.rsqrt %32 : vector<2x1xf32>
    %34 = vector.broadcast %33 : vector<2x1xf32> to vector<2x384xf32>
    %35 = arith.mulf %27, %34 : vector<2x384xf32>
    %c0_26 = arith.constant 0 : index
    %c0_27 = arith.constant 0 : index
    %36 = vector.load %arg7[%c0_26, %c0_27] : memref<2x384xf32, #tpu.memory_space<vmem>>, vector<2x384xf32>
    tpu.vector_store %arg7[%c0_26, %c0_27], %35 {strides = array<i32>} : memref<2x384xf32, #tpu.memory_space<vmem>>, vector<2x384xf32>,
    return
  }
}

</mosaic_0001>

<bundles_post_ra>
// kernel: timm_vit_model_forward.1
= control target key start
LH: loop header
LB: loop body
LE: loop exit
PB: predicated region body
PF: predicated region fallthrough
CT: control target
= control target key end

     0   :  { %vm46_vm0 = vcmask 523264   ;;  %s794_s0 = inlined_call_operand.vmem [shape: f32[32,64], index: 0, kind: input, shape index: {}]   ;;  %s795_s1 = inlined_call_operand.vmem [shape: f32[64,32], index: 1, kind: input, shape index: {}]   ;;  %s796_s2 = inlined_call_operand.vmem [shape: f32[1,32], index: 2, kind: input, shape index: {}]   ;;  %s797_s3 = inlined_call_operand.vmem [shape: f32[1,16,32], index: 3, kind: input, shape index: {}]   ;;  %s798_s4 = inlined_call_operand.vmem [shape: f32[1,32], index: 4, kind: input, shape index: {}]   ;;  %s799_s5 = inlined_call_operand.vmem [shape: f32[64,384], index: 5, kind: input, shape index: {}]   ;;  %s800_s6 = inlined_call_operand.vmem [shape: f32[1,384], index: 6, kind: input, shape index: {}]   ;;  %s801_s7 = inlined_call_operand.hbm [shape: f32[2,384], index: 7, kind: output, shape index: {}]  }
   0x1   :  { %v31_v0 = vld [vmem:[%s795_s1] sm:$0xff]  ;;  %v32_v1 = vld [vmem:[%s795_s1 + $0x8] sm:$0xff]  ;;  %v33_v2 = vld [vmem:[%s795_s1 + $0x10] sm:$0xff] }
   0x2   :  { %v519_v3 = vpack.c.bf16 %v32_v1, %v31_v0  ;;  %v34_v4 = vld [vmem:[%s795_s1 + $0x18] sm:$0xff]  ;;  %v35_v6 = vld [vmem:[%s795_s1 + $0x20] sm:$0xff]  ;;  %v36_v7 = vld [vmem:[%s795_s1 + $0x28] sm:$0xff] }
   0x3   :  { %v523_v5 = vpack.c.bf16 %v34_v4, %v33_v2  ;;  %v27_v8 = vld [vmem:[%s794_s0] sm:$0xff] }
   0x4   :  { %520 = vmatprep.subr.bf16.mxu0 %v519_v3  ;;  %494 = vmatprep.mubr.msk.f32.mxu0 %vm46_vm0, %v27_v8 }
   0x5   :  { %522 = vmatpush3.bf16.msra.mxu0 %v519_v3 }
   0x6   :  { %12 = vsyncpa [#allocation4], 0  ;;  %524 = vmatprep.subr.bf16.mxu0 %v523_v5  ;;  %v527_v9 = vpack.c.bf16 %v36_v7, %v35_v6  ;;  %v37_v10 = vld [vmem:[%s795_s1 + $0x30] sm:$0xff]  ;;  %v38_v11 = vld [vmem:[%s795_s1 + $0x38] sm:$0xff]  ;;  %v595_v20 = vmov 0.0|0.0   ;;  %vm201_vm1 = vcmask 254976  }
   0x7   :  { %v531_v12 = vpack.c.bf16 %v38_v11, %v37_v10  ;;  %v28_v13 = vld [vmem:[%s794_s0 + $0x8] sm:$0xff]  ;;  %v29_v14 = vld [vmem:[%s794_s0 + $0x10] sm:$0xff]  ;;  %v30_v15 = vld [vmem:[%s794_s0 + $0x18] sm:$0xff]  ;;  %vm150_vm2 = vcmask 261120   ;;  %vm597_vm3 = vmmov 0   ;;  %vm205_vm4 = vcmask 1041409  }
   0x8   :  { %v214_v16 = vld [vmem:[%s799_s5 + $0x8] sm:$0xff]  ;;  %v217_v17 = vld [vmem:[%s799_s5 + $0x20] sm:$0xff]  ;;  %v216_v21 = vld [vmem:[%s799_s5 + $0x18] sm:$0xff]  ;;  %vm210_vm5 = vcmask 517376   ;;  %vm401_vm6 = vcmask 1041408  }
   0x9   :  { %526 = vmatpush3.bf16.msra.mxu0 %v523_v5  ;;  %v213_v18 = vld [vmem:[%s799_s5] sm:$0xff]  ;;  %v535_v19 = vpack.c.bf16 %v217_v17, %v214_v16  ;;  %v215_v22 = vld [vmem:[%s799_s5 + $0x10] sm:$0xff]  ;;  %v218_v23 = vld [vmem:[%s799_s5 + $0x28] sm:$0xff] }
   0xa   :  { %528 = vmatprep.subr.bf16.mxu0 %v527_v9  ;;  %v537_v24 = vpack.c.bf16 %v216_v21, %v213_v18  ;;  %v552_v25 = vpack.c.bf16 %v218_v23, %v215_v22  ;;  %v220_v26 = vld [vmem:[%s799_s5 + $0x38] sm:$0xff]  ;;  %v223_v27 = vld [vmem:[%s799_s5 + $0x50] sm:$0xff]  ;;  %v222_v30 = vld [vmem:[%s799_s5 + $0x48] sm:$0xff] }
   0xb   :  { %v219_v28 = vld [vmem:[%s799_s5 + $0x30] sm:$0xff]  ;;  %536 = vmatprep.subr.bf16.mxu1 %v535_v19  ;;  %v539_v29 = vpack.c.bf16 %v223_v27, %v220_v26  ;;  %v221_v31 = vld [vmem:[%s799_s5 + $0x40] sm:$0xff]  ;;  %v224_v32 = vld [vmem:[%s799_s5 + $0x58] sm:$0xff] }
   0xc   :  { %538 = vmatpush1.bf16.msra.mxu1 %v537_v24  ;;  %v541_v33 = vpack.c.bf16 %v222_v30, %v219_v28  ;;  %v555_v34 = vpack.c.bf16 %v224_v32, %v221_v31  ;;  %v454_v35 = vld [vmem:[%s798_s4] ss:$0 sm:$0xff]  ;;  %v145_v38 = vld [vmem:[%s797_s3 + $0x8] sm:$0xff]  ;;  %v228_v18 = vld [vmem:[%s799_s5 + $0x78] sm:$0xff] }
   0xd   :  { %530 = vmatpush3.bf16.msra.mxu0 %v527_v9  ;;  %540 = vmatprep.subr.bf16.mxu1 %v539_v29  ;;  %202 = vst.msk [vmem:[#allocation2] sm:$0x3] %vm201_vm1, %v454_v35  ;;  %v449_v36 = vld [vmem:[%s796_s2] ss:$0 sm:$0xff]  ;;  %v226_v11 = vld [vmem:[%s799_s5 + $0x68] sm:$0xff]  ;;  %v227_v22 = vld [vmem:[%s799_s5 + $0x70] sm:$0xff] }
   0xe   :  { %532 = vmatprep.subr.bf16.mxu0 %v531_v12  ;;  %v144_v41 = vld [vmem:[%s797_s3] sm:$0xff]  ;;  %v230_v23 = vld [vmem:[%s799_s5 + $0x88] sm:$0xff]  ;;  %v232_v28 = vld [vmem:[%s799_s5 + $0x98] sm:$0xff] }
   0xf   :  { %v225_v17 = vld [vmem:[%s799_s5 + $0x60] sm:$0xff]  ;;  %v235_v29 = vld [vmem:[%s799_s5 + $0xb0] sm:$0xff]  ;;  %v558_v31 = vpack.c.bf16 %v230_v23, %v227_v22  ;;  %v236_v35 = vld [vmem:[%s799_s5 + $0xb8] sm:$0xff] }
  0x10   :  { %542 = vmatpush1.bf16.msra.mxu1 %v541_v33  ;;  %v545_v21 = vpack.c.bf16 %v228_v18, %v225_v17  ;;  %v231_v30 = vld [vmem:[%s799_s5 + $0x90] sm:$0xff]  ;;  %v547_v32 = vpack.c.bf16 %v235_v29, %v232_v28  ;;  %v234_v33 = vld [vmem:[%s799_s5 + $0xa8] sm:$0xff] }
  0x11   :  { %534 = vmatpush3.bf16.msra.mxu0 %v531_v12  ;;  %v229_v12 = vld [vmem:[%s799_s5 + $0x80] sm:$0xff] }
  0x12   :  { %551 = vmatprep.subr.bf16.mxu0 %v595_v20  ;;  %v543_v19 = vpack.c.bf16 %v229_v12, %v226_v11 }
  0x14   :  { %495 = vmatmul.mubr.msk.f32.vlgmr.msra.gmra.mrb[0].mxu0 %vm46_vm0, %v28_v13  ;;  %544 = vmatprep.subr.bf16.mxu1 %v543_v19 }
  0x15   :  { %497 = vmatprep.mubr.msk.f32.mxu0 %vm46_vm0, %v29_v14  ;;  %553 = vmatpush3.bf16.msra.mxu0 %v552_v25 }
  0x16   :  { %554 = vmatprep.subr.bf16.mxu0 %v595_v20  ;;  %546 = vmatpush1.bf16.msra.mxu1 %v545_v21 }
  0x17   :  { %548 = vmatprep.subr.bf16.mxu1 %v547_v32 }
  0x18   :  { %498 = vmatmul.mubr.msk.f32.gmra.mrb[2].mxu0 %vm46_vm0, %v30_v15 }
  0x19   :  { %556 = vmatpush3.bf16.msra.mxu0 %v555_v34  ;;  %v233_v34 = vld [vmem:[%s799_s5 + $0xa0] sm:$0xff]  ;;  %s598_s5 = smov 32  }
  0x1a   :  { %557 = vmatprep.subr.bf16.mxu0 %v595_v20 }
  0x1d   :  { %559 = vmatpush3.bf16.msra.mxu0 %v558_v31 }
  0x1e   :  { %560 = vmatprep.subr.bf16.mxu0 %v595_v20  ;;  %v239_v20 = vlaneseq }
  0xe7   :  { %v496_v37 = vpop.f32.mrb[0].mxu0 }
  0xe8   :  { %v131_v39 = vadd.f32 %v496_v37, %v449_v36  ;;  %v125_v40 = vpop.f32.mrb[1].mxu0 }
  0xe9   :  { %v126_v42 = vadd.f32 %v449_v36, %v125_v40  ;;  %v596_v40 = vmov 0.0  }
  0xea   :  { %v147_v43 = vadd.f32 %v145_v38, %v131_v39  ;;  %v549_v39 = vpack.c.bf16 %v234_v33, %v231_v30  ;;  %321 = vmatprep.mubr.f32.mxu1 %v596_v40  ;;  %516 = vmatprep.mubr.msk.f32.mxu0 %vm597_vm3, %v596_v40 }
  0xeb   :  { %v146_v44 = vadd.f32 %v144_v41, %v126_v42  ;;  %v499_v45 = vpop.f32.mrb[2].mxu0 }
  0xec   :  { %v152_v46 = vsel %vm150_vm2, %v147_v43, 0.0  ;;  %v173_v47 = vsel %vm150_vm2, %v147_v43, -inf  ;;  %v141_v48 = vadd.f32 %v499_v45, %v449_v36  ;;  %v135_v49 = vpop.f32.mrb[3].mxu0  ;;  %550 = vmatpush1.bf16.msra.mxu1 %v549_v39 }
  0xed   :  { %v151_v50 = vsel %vm150_vm2, %v146_v44, 0.0  ;;  %v172_v51 = vsel %vm150_vm2, %v146_v44, -inf  ;;  %v136_v52 = vadd.f32 %v449_v36, %v135_v49 }
  0xee   :  { %v153_v53 = vadd.f32 %v152_v46, %v151_v50  ;;  %v174_v54 = vmax.f32 %v172_v51, %v173_v47  ;;  %v149_v55 = vadd.f32 %v145_v38, %v141_v48 }
  0xef   :  { %v148_v56 = vadd.f32 %v144_v41, %v136_v52  ;;  %v561_v41 = vpack.c.bf16 %v236_v35, %v233_v34  ;;  %v240_v52 = vshrl.u32 %v239_v20, 7 }
  0xf0   :  { %v154_v57 = vrot.slane %v153_v53, 4  ;;  %v175_v58 = vrot.slane %v174_v54, 4  ;;  %v161_v59 = vsel %vm150_vm2, %v149_v55, 0.0  ;;  %v182_v60 = vsel %vm150_vm2, %v149_v55, -inf  ;;  %v237_v55 = vld [vmem:[%s800_s6] sm:$0x7] }
  0xf1   :  { %v160_v61 = vsel %vm150_vm2, %v148_v56, 0.0  ;;  %v181_v62 = vsel %vm150_vm2, %v148_v56, -inf  ;;  %562 = vmatpush3.bf16.msra.mxu0 %v561_v41  ;;  %v245_v56 = vsub.s32 1, %v240_v52  ;;  %s600_s6 = smov [#allocation3]  }
  0xf2   :  { %v155_v63 = vadd.f32 %v154_v57, %v153_v53  ;;  %v176_v0 = vmax.f32 %v174_v54, %v175_v58  ;;  %v162_v1 = vadd.f32 %v161_v59, %v160_v61  ;;  %v183_v2 = vmax.f32 %v181_v62, %v182_v60  ;;  %s441_s4 = sshll.u32 %s600_s6, 4  ;;  %s442_s4 = int_to_ptr.vmem [resolvable:$true] %s441_s4 }
  0xf3   :  { %v241_v53 = vsub.s32 0, %v240_v52  ;;  %v249_v54 = vsub.s32 2, %v240_v52  ;;  %v246_v59 = vrot.slane %v237_v55, %v245_v56  ;;  %s571_s29 = scalar_lea.vmem %s442_s4, 96  ;;  %p576_p1 = scmp.lt.s32.totalorder %s442_s4, %s442_s4 }
  0xf4   :  { %v156_v3 = vrot.slane %v155_v63, 2  ;;  %v177_v4 = vrot.slane %v176_v0, 2  ;;  %v163_v5 = vrot.slane %v162_v1, 4  ;;  %v184_v6 = vrot.slane %v183_v2, 4  ;;  %p572_p0 = scmp.ne.s32.totalorder %s442_s4, %s571_s29  ;;  %p577_p2 = scmp.lt.s32.totalorder %s571_s29, %s571_s29 }
  0xf5   :  { %v242_v57 = vrot.slane %v237_v55, %v241_v53  ;;  %v250_v58 = vrot.slane %v237_v55, %v249_v54 }
  0xf6   :  { %v157_v7 = vadd.f32 %v156_v3, %v155_v63  ;;  %v164_v8 = vadd.f32 %v163_v5, %v162_v1  ;;  %v185_v9 = vmax.f32 %v183_v2, %v184_v6  ;;  %v178_v10 = vmax.f32 %v176_v0, %v177_v4  ;;  %p578_p3 = por %p577_p2, %p576_p1 }
  0xf8   :  { %v165_v13 = vrot.slane %v164_v8, 2  ;;  %v186_v14 = vrot.slane %v185_v9, 2  ;;  %v158_v15 = vrot.slane %v157_v7, 1  ;;  %v179_v16 = vrot.slane %v178_v10, 1  ;;  %p579_p4 = pnand %p578_p3, %p572_p0 }
  0xfa   :  { %v166_v24 = vadd.f32 %v165_v13, %v164_v8  ;;  %v159_v25 = vadd.f32 %v158_v15, %v157_v7  ;;  %v180_v26 = vmax.f32 %v178_v10, %v179_v16  ;;  %v187_v27 = vmax.f32 %v185_v9, %v186_v14 }
  0xfb   :  { %v599_v13 = vmov 1983009808  }
  0xfc   :  { %v167_v36 = vrot.slane %v166_v24, 1  ;;  %v170_v37 = vmul.f32 0.0625, %v159_v25  ;;  %v188_v38 = vrot.slane %v187_v27, 1  ;;  %v419_v14 = vunpack.c.l.s4 %v599_v13 }
  0xfe   :  { %v168_v42 = vadd.f32 %v167_v36, %v166_v24  ;;  %v190_v43 = vadd.f32 %v180_v26, %v170_v37  ;;  %v189_v45 = vmax.f32 %v187_v27, %v188_v38  ;;  %v420_v15 = vunpack.c.0.s8 %v419_v14 }
 0x100   :  { %v171_v44 = vmul.f32 0.0625, %v168_v42  ;;  %v192_v47 = vmul.f32 0.5, %v190_v43  ;;  %v423_v21 = vsub.s32 %v420_v15, %v240_v52 }
 0x102   :  { %v191_v46 = vadd.f32 %v189_v45, %v171_v44 }
 0x104   :  { %v193_v48 = vmul.f32 0.5, %v191_v46 }
 0x106   :  { %v206_v49 = vsel %vm205_vm4, %v193_v48, %v192_v47 }
 0x107   :  { %207 = vrot.lane.b32.xlu0 %v206_v49, %s598_s5 }
 0x179   :  { %v208_v50 = vpop.permute.xlu0 %207 }
 0x17a   :  { %211 = vst.msk [vmem:[#allocation2] sm:$0x3] %vm210_vm5, %v208_v50 }
 0x181   :  { %v212_v51 = vld [vmem:[#allocation2] sm:$0x3] }
 0x182   :  { %455 = vmatmul.mubr.msk.f32.vlgmr.msra.gmra.mrb[0].mxu1 %vm46_vm0, %v212_v51  ;;  %517 = vmatmul.mubr.msk.f32.vlgmr.msra.gmra.mrb[4].mxu0 %vm46_vm0, %v212_v51 }
 0x255   :  { %v323_v60 = vpop.f32.mrb[0].mxu1  ;;  %v394_v61 = vpop.f32.mrb[4].mxu0 }
 0x256   :  { %v324_v62 = vadd.f32 %v323_v60, %v242_v57  ;;  %v395_v63 = vadd.f32 %v394_v61, %v250_v58  ;;  %v325_v0 = vpop.f32.mrb[1].mxu1  ;;  %v518_v1 = vpop.f32.mrb[5].mxu0 }
 0x257   :  { %v326_v2 = vadd.f32 %v325_v0, %v246_v59 }
 0x258   :  { %v398_v3 = vmul.f32 %v324_v62, %v324_v62  ;;  %v400_v4 = vmul.f32 %v395_v63, %v395_v63 }
 0x259   :  { %v399_v5 = vmul.f32 %v326_v2, %v326_v2 }
 0x25a   :  { %v402_v6 = vsel %vm401_vm6, %v398_v3, 0.0  ;;  %v405_v9 = vsel %vm401_vm6, %v400_v4, 0.0 }
 0x25b   :  { %v403_v7 = vsel %vm401_vm6, %v399_v5, 0.0 }
 0x25c   :  { %v404_v8 = vadd.f32 %v403_v7, %v402_v6 }
 0x25e   :  { %v406_v10 = vadd.f32 %v405_v9, %v404_v8 }
 0x260   :  { %407 = vadd.xlane.f32.xlu0 %v406_v10 }
 0x2ed   :  { %v408_v11 = vpop.xlane.xlu0 %407 }
 0x2ee   :  { %v409_v12 = vmax.f32 %v408_v11, 1e-24 }
 0x2f0   :  { %569 = vrsqrt.f32 %v409_v12 }
 0x2fa   :  { %v570_v16 = vpop.eup %569 }
 0x2fb   :  { %v411_v17 = vmul.f32 %v570_v16, %v324_v62  ;;  %v412_v18 = vmul.f32 %v570_v16, %v326_v2  ;;  %v413_v19 = vmul.f32 %v570_v16, %v395_v63 }
 0x2fd   :  { %v417_v22 = vcombine.low %v411_v17, %v412_v18  ;;  %v431_v24 = vrot.slane %v413_v19, %v423_v21 }
 0x2ff   :  { %v424_v23 = vrot.slane %v417_v22, %v423_v21 }
 0x301   :  { %v432_v25 = vcombine.low %v424_v23, %v431_v24 }
 0x303   :  { %434 = vst [vmem:[#allocation3] sm:$0x3f] %v432_v25 }
 0x304   :  { %582 = shalt.err (!%p579_p4)
}
 0x305   :  { %s583_s30 = scalar_lea.hbm %s801_s7, 96 }
 0x306   :  { %p584_p5 = scmp.ne.s32.totalorder %s801_s7, %s583_s30  ;;  %p587_p6 = scmp.lt.u32.totalorder %s583_s30, %s801_s7 }
 0x308   :  { %p589_p7 = pnand %p587_p6, %p584_p5 }
 0x30a   :  { %592 = shalt.err (!%p589_p7)
}
 0x30b   :  { %444 = dma.vmem_to_hbm [thread:$0]  %s442_s4, 96, %s801_s7, [#allocation4]  }
 0x30c   :  { %593 = dma.done.wait [#allocation4], 96  }
 0x30d   :  { %594 = vsyncadd [#allocation4], 4294967200 }
 0x30e   :  { %448 = vsyncpa [#allocation4], 1 }

</bundles_post_ra>
